<compile_context>
chip_gen: v5e
topology: v5e:2x2
jax: 0.10.0
libtpu: 0.0.40
codegen_flags: <defaults>
</compile_context>

<pallas_src>
import functools

import jax
import jax.numpy as jnp
from jax.experimental import pallas as pl
from jax.experimental.pallas import tpu as pltpu


# ----------------------------------------------------------------------------
# Fused kernel: projection + lambda + aux heads for one batch tile.
# ----------------------------------------------------------------------------

def _fused_heads_kernel(p4_ref, xaux_ref, w1_ref, b1_ref, w2_ref, b2_ref,
                        wl_ref, sc_ref, proj_ref, extras_ref):
    """proj = L2norm(ReLU(p4@W1+b1)@W2+b2); extras lane0 = exp(p4.wl+bl), lane1 = aux."""
    x = p4_ref[...].astype(jnp.float32)                                   # [TB, D]

    # --- projection head (MXU matmuls, bf16-friendly, f32 accumulate) ---
    h = jnp.dot(x.astype(w1_ref.dtype), w1_ref[...],
                preferred_element_type=jnp.float32) + b1_ref[...].astype(jnp.float32)
    h = jnp.maximum(h, 0.0)                                               # ReLU
    z = jnp.dot(h.astype(w2_ref.dtype), w2_ref[...],
                preferred_element_type=jnp.float32) + b2_ref[...].astype(jnp.float32)
    # F.normalize(dim=1): z / max(||z||, 1e-12)  ==  z * rsqrt(max(sum(z^2), 1e-24))
    sq = jnp.sum(z * z, axis=1, keepdims=True)                            # [TB, 1]
    inv = jax.lax.rsqrt(jnp.maximum(sq, 1e-24))
    proj_ref[...] = (z * inv).astype(proj_ref.dtype)

    # --- lambda head (num_classes == 1): VPU multiply + lane reduce, no MXU ---
    wl_row = wl_ref[...].astype(jnp.float32)                              # [1, D]
    lam = jnp.exp(jnp.sum(x * wl_row, axis=1, keepdims=True) + sc_ref[0]) # [TB, 1]

    # --- aux head: Linear(1, 1) (scalar multiply-add) ---
    aux = xaux_ref[...].astype(jnp.float32) * sc_ref[1] + sc_ref[2]       # [TB, 1]

    # Pack both [TB,1] results into one lane-dense [TB,128] slab (single dense vst).
    lane = jax.lax.broadcasted_iota(jnp.int32, extras_ref.shape, 1)
    extras = jnp.where(lane == 0, lam, jnp.where(lane == 1, aux, 0.0))
    extras_ref[...] = extras.astype(extras_ref.dtype)


# ----------------------------------------------------------------------------
# Wrapper: one fused pallas_call over a batch grid.
# ----------------------------------------------------------------------------

@functools.partial(jax.jit, static_argnames=("tb",))
def fused_aux_heads(p4, x_aux, w1, b1, w2, b2, wl, bl, wa, ba, *, tb=128):
    """Returns (projected [B,128], lambda [B] (squeezed), aux_out [B,1])."""
    B, D = p4.shape
    PROJ = w2.shape[1]
    C = wl.shape[1]
    assert C == 1, "VPU lambda path assumes num_classes == 1 (BaseModel default)"
    tb = min(tb, B)
    assert B % tb == 0 and (tb % 8 == 0 or tb == B)

    wl_row = wl.T.astype(jnp.float32)                       # [1, D] for lane-broadcast
    scalars = jnp.concatenate([bl.reshape(1), wa.reshape(1), ba.reshape(1)]
                              ).astype(jnp.float32)         # [bl, wa, ba] in SMEM

    const2 = lambda i: (0, 0)
    proj, extras = pl.pallas_call(
        _fused_heads_kernel,
        grid_spec=pltpu.PrefetchScalarGridSpec(
            num_scalar_prefetch=0,
            grid=(B // tb,),
            in_specs=[
                pl.BlockSpec((tb, D), lambda i: (i, 0)),     # p4 tile
                pl.BlockSpec((tb, 1), lambda i: (i, 0)),     # aux input tile
                pl.BlockSpec((D, D), const2),                # W1 (VMEM-resident)
                pl.BlockSpec((1, D), const2),                # b1
                pl.BlockSpec((D, PROJ), const2),             # W2 (VMEM-resident)
                pl.BlockSpec((1, PROJ), const2),             # b2
                pl.BlockSpec((1, D), const2),                # wl row
                pl.BlockSpec((3,), lambda i: (0,),
                             memory_space=pltpu.MemorySpace.SMEM),  # [bl, wa, ba]
            ],
            out_specs=[
                pl.BlockSpec((tb, PROJ), lambda i: (i, 0)),  # projection
                pl.BlockSpec((tb, 128), lambda i: (i, 0)),   # packed lambda/aux slab
            ],
        ),
        out_shape=(
            jax.ShapeDtypeStruct((B, PROJ), jnp.float32),
            jax.ShapeDtypeStruct((B, 128), jnp.float32),
        ),
        compiler_params=pltpu.CompilerParams(
            dimension_semantics=("parallel",),               # shard batch across TCs (v7x)
        ),
    )(p4, x_aux, w1, b1, w2, b2, wl_row, scalars)

    lambd = jnp.squeeze(extras[:, 0])        # matches .squeeze() in forward_lambda
    aux_out = extras[:, 1:2]                 # [B, 1], matches forward_aux_classifier
    return proj, lambd, aux_out


# ----------------------------------------------------------------------------
# Deterministic parameter construction (mimics nn.Linear default init:
# U(-1/sqrt(fan_in), 1/sqrt(fan_in)); lambda_linear.bias filled with 0.0).
# ----------------------------------------------------------------------------

def _linear_params(key, fan_in, fan_out, zero_bias=False):
    kw, kb = jax.random.split(key)
    bound = 1.0 / float(fan_in) ** 0.5
    w = jax.random.uniform(kw, (fan_in, fan_out), jnp.float32, -bound, bound)
    if zero_bias:
        b = jnp.zeros((1, fan_out), jnp.float32)
    else:
        b = jax.random.uniform(kb, (1, fan_out), jnp.float32, -bound, bound)
    return w, b


if __name__ == "__main__":
    key = jax.random.PRNGKey(0)
    k_p4, k_w1, k_w2, k_wl, k_wa, k_aux = jax.random.split(key, 6)

    # Small synthetic config (a concrete subclass would set these before
    # build_aux_layers); num_classes=1 matches BaseModel.__init__.
    B = 64                      # batch (2 grid tiles of TB=32)
    D = 32                      # penultimate_layer_dim
    PROJ = 128                  # projection output dim (fixed in build_aux_layers)
    TB = 32                     # batch tile

    p4 = jax.random.normal(k_p4, (B, D), jnp.float32)           # penultimate features
    x_aux = jax.random.normal(k_aux, (B, 1), jnp.float32)       # aux-classifier input

    # projection = Linear(D, D) -> ReLU -> Linear(D, 128)
    w1, b1 = _linear_params(k_w1, D, D)
    w2, b2 = _linear_params(k_w2, D, PROJ)
    # lambda_linear = Linear(D, 1), bias filled with 0.0
    wl, bl = _linear_params(k_wl, D, 1, zero_bias=True)
    # aux_linear = Linear(1, 1)
    wa, ba = _linear_params(k_wa, 1, 1)

    # ---- run the fused Pallas kernel ---------------------------------------
    projected, lambd, aux_out = fused_aux_heads(
        p4, x_aux, w1, b1, w2, b2, wl, bl, wa, ba, tb=TB)
    jax.block_until_ready((projected, lambd, aux_out))

    # ---- pure-JAX reference checks -----------------------------------------
    h_ref = jnp.maximum(p4 @ w1 + b1, 0.0)
    z_ref = h_ref @ w2 + b2
    proj_ref = z_ref / jnp.maximum(
        jnp.sqrt(jnp.sum(z_ref * z_ref, axis=1, keepdims=True)), 1e-12)
    lambd_ref = jnp.squeeze(jnp.exp(p4 @ wl + bl))
    aux_ref = x_aux * wa[0, 0] + ba[0, 0]

    assert projected.shape == (B, PROJ)
    assert lambd.shape == (B,)
    assert aux_out.shape == (B, 1)
    assert jnp.allclose(projected, proj_ref, atol=1e-5)
    assert jnp.allclose(lambd, lambd_ref, atol=1e-5)
    assert jnp.allclose(aux_out, aux_ref, atol=1e-5)

    print("KERNEL_OK")
</pallas_src>

<mosaic_0001>
module attributes {stable_mosaic.version = 11 : i64} {
  func.func @_fused_heads_kernel(%arg0: i32, %arg1: memref<32x32xf32, #tpu.memory_space<vmem>>, %arg2: memref<32x1xf32, #tpu.memory_space<vmem>>, %arg3: memref<32x32xf32, #tpu.memory_space<vmem>>, %arg4: memref<1x32xf32, #tpu.memory_space<vmem>>, %arg5: memref<32x128xf32, #tpu.memory_space<vmem>>, %arg6: memref<1x128xf32, #tpu.memory_space<vmem>>, %arg7: memref<1x32xf32, #tpu.memory_space<vmem>>, %arg8: memref<3xf32, #tpu.memory_space<smem>>, %arg9: memref<32x128xf32, #tpu.memory_space<vmem>>, %arg10: memref<32x128xf32, #tpu.memory_space<vmem>>) attributes {dimension_semantics = [#tpu.dimension_semantics<parallel>], iteration_bounds = array<i64: 2>, scalar_prefetch = 0 : i64, scratch_operands = 0 : i64, tpu.core_type = #tpu.core_type<tc>, window_params = [{transform_indices = @transform_0, window_bounds = array<i64: 32, 32>}, {transform_indices = @transform_1, window_bounds = array<i64: 32, 1>}, {pipeline_mode = #tpu.pipeline_mode<synchronous>, transform_indices = @transform_2, window_bounds = array<i64: 32, 32>}, {pipeline_mode = #tpu.pipeline_mode<synchronous>, transform_indices = @transform_3, window_bounds = array<i64: 1, 32>}, {pipeline_mode = #tpu.pipeline_mode<synchronous>, transform_indices = @transform_4, window_bounds = array<i64: 32, 128>}, {pipeline_mode = #tpu.pipeline_mode<synchronous>, transform_indices = @transform_5, window_bounds = array<i64: 1, 128>}, {pipeline_mode = #tpu.pipeline_mode<synchronous>, transform_indices = @transform_6, window_bounds = array<i64: 1, 32>}, {transform_indices = @transform_7, window_bounds = array<i64: 3>}, {transform_indices = @transform_8, window_bounds = array<i64: 32, 128>}, {transform_indices = @transform_9, window_bounds = array<i64: 32, 128>}]} {
    %c0 = arith.constant 0 : index
    %c0_0 = arith.constant 0 : index
    %0 = vector.load %arg1[%c0, %c0_0] : memref<32x32xf32, #tpu.memory_space<vmem>>, vector<32x32xf32>
    %c0_1 = arith.constant 0 : index
    %c0_2 = arith.constant 0 : index
    %1 = vector.load %arg3[%c0_1, %c0_2] : memref<32x32xf32, #tpu.memory_space<vmem>>, vector<32x32xf32>
    %cst = arith.constant dense<0.000000e+00> : vector<32x32xf32>
    %2 = tpu.matmul %0, %1, %cst {dimension_numbers = #tpu.dot_dimension_numbers<[1], [0], [0], [1], [0, 0, 1, 1], [], []>} : vector<32x32xf32>, vector<32x32xf32>, vector<32x32xf32> -> vector<32x32xf32>
    %c0_3 = arith.constant 0 : index
    %c0_4 = arith.constant 0 : index
    %3 = vector.load %arg4[%c0_3, %c0_4] : memref<1x32xf32, #tpu.memory_space<vmem>>, vector<1x32xf32>
    %4 = vector.broadcast %3 : vector<1x32xf32> to vector<32x32xf32>
    %5 = arith.addf %2, %4 : vector<32x32xf32>
    %cst_5 = arith.constant 0.000000e+00 : f32
    %6 = vector.broadcast %cst_5 : f32 to vector<32x32xf32>
    %7 = arith.maximumf %5, %6 : vector<32x32xf32>
    %c0_6 = arith.constant 0 : index
    %c0_7 = arith.constant 0 : index
    %8 = vector.load %arg5[%c0_6, %c0_7] : memref<32x128xf32, #tpu.memory_space<vmem>>, vector<32x128xf32>
    %cst_8 = arith.constant dense<0.000000e+00> : vector<32x128xf32>
    %9 = tpu.matmul %7, %8, %cst_8 {dimension_numbers = #tpu.dot_dimension_numbers<[1], [0], [0], [1], [0, 0, 1, 1], [], []>} : vector<32x32xf32>, vector<32x128xf32>, vector<32x128xf32> -> vector<32x128xf32>
    %c0_9 = arith.constant 0 : index
    %c0_10 = arith.constant 0 : index
    %10 = vector.load %arg6[%c0_9, %c0_10] : memref<1x128xf32, #tpu.memory_space<vmem>>, vector<1x128xf32>
    %11 = vector.broadcast %10 : vector<1x128xf32> to vector<32x128xf32>
    %12 = arith.addf %9, %11 : vector<32x128xf32>
    %13 = arith.mulf %12, %12 : vector<32x128xf32>
    %cst_11 = arith.constant dense<0.000000e+00> : vector<32xf32>
    %14 = vector.multi_reduction <add>, %13, %cst_11 [1] : vector<32x128xf32> to vector<32xf32>
    %15 = vector.shape_cast %14 : vector<32xf32> to vector<32x1xf32>
    %cst_12 = arith.constant 1.000000e-24 : f32
    %16 = vector.broadcast %cst_12 : f32 to vector<32x1xf32>
    %17 = arith.maximumf %15, %16 : vector<32x1xf32>
    %18 = math.rsqrt %17 : vector<32x1xf32>
    %19 = vector.broadcast %18 : vector<32x1xf32> to vector<32x128xf32>
    %20 = arith.mulf %12, %19 : vector<32x128xf32>
    %c0_13 = arith.constant 0 : index
    %c0_14 = arith.constant 0 : index
    %21 = vector.load %arg9[%c0_13, %c0_14] : memref<32x128xf32, #tpu.memory_space<vmem>>, vector<32x128xf32>
    tpu.vector_store %arg9[%c0_13, %c0_14], %20 {strides = array<i32>} : memref<32x128xf32, #tpu.memory_space<vmem>>, vector<32x128xf32>,
    %c0_15 = arith.constant 0 : index
    %c0_16 = arith.constant 0 : index
    %22 = vector.load %arg7[%c0_15, %c0_16] : memref<1x32xf32, #tpu.memory_space<vmem>>, vector<1x32xf32>
    %23 = vector.broadcast %22 : vector<1x32xf32> to vector<32x32xf32>
    %24 = arith.mulf %0, %23 : vector<32x32xf32>
    %cst_17 = arith.constant dense<0.000000e+00> : vector<32xf32>
    %25 = vector.multi_reduction <add>, %24, %cst_17 [1] : vector<32x32xf32> to vector<32xf32>
    %26 = vector.shape_cast %25 : vector<32xf32> to vector<32x1xf32>
    %c0_18 = arith.constant 0 : index
    %27 = memref.load %arg8[%c0_18] : memref<3xf32, #tpu.memory_space<smem>>
    %28 = vector.broadcast %27 : f32 to vector<32x1xf32>
    %29 = arith.addf %26, %28 : vector<32x1xf32>
    %30 = math.exp %29 : vector<32x1xf32>
    %c0_19 = arith.constant 0 : index
    %c0_20 = arith.constant 0 : index
    %31 = vector.load %arg2[%c0_19, %c0_20] : memref<32x1xf32, #tpu.memory_space<vmem>>, vector<32x1xf32>
    %c1 = arith.constant 1 : index
    %32 = memref.load %arg8[%c1] : memref<3xf32, #tpu.memory_space<smem>>
    %33 = vector.broadcast %32 : f32 to vector<32x1xf32>
    %34 = arith.mulf %31, %33 : vector<32x1xf32>
    %c2 = arith.constant 2 : index
    %35 = memref.load %arg8[%c2] : memref<3xf32, #tpu.memory_space<smem>>
    %36 = vector.broadcast %35 : f32 to vector<32x1xf32>
    %37 = arith.addf %34, %36 : vector<32x1xf32>
    %38 = tpu.iota {dimensions = array<i32: 1>} : vector<32x128xi32>
    %c0_i32 = arith.constant 0 : i32
    %39 = vector.broadcast %c0_i32 : i32 to vector<32x128xi32>
    %40 = arith.cmpi eq, %38, %39 : vector<32x128xi32>
    %c1_i32 = arith.constant 1 : i32
    %41 = vector.broadcast %c1_i32 : i32 to vector<32x128xi32>
    %42 = arith.cmpi eq, %38, %41 : vector<32x128xi32>
    %cst_21 = arith.constant 0.000000e+00 : f32
    %43 = vector.shape_cast %37 : vector<32x1xf32> to vector<32x1xf32>
    %44 = vector.broadcast %43 : vector<32x1xf32> to vector<32x128xf32>
    %45 = vector.broadcast %cst_21 : f32 to vector<32x128xf32>
    %46 = arith.select %42, %44, %45 : vector<32x128xi1>, vector<32x128xf32>
    %47 = vector.shape_cast %30 : vector<32x1xf32> to vector<32x1xf32>
    %48 = vector.broadcast %47 : vector<32x1xf32> to vector<32x128xf32>
    %49 = arith.select %40, %48, %46 : vector<32x128xi1>, vector<32x128xf32>
    %c0_22 = arith.constant 0 : index
    %c0_23 = arith.constant 0 : index
    %50 = vector.load %arg10[%c0_22, %c0_23] : memref<32x128xf32, #tpu.memory_space<vmem>>, vector<32x128xf32>
    tpu.vector_store %arg10[%c0_22, %c0_23], %49 {strides = array<i32>} : memref<32x128xf32, #tpu.memory_space<vmem>>, vector<32x128xf32>,
    return
  }
  func.func @transform_0(%arg0: i32) -> (i32, i32) {
    %c0_i32 = arith.constant 0 : i32
    %c0_i32_0 = arith.constant 0 : i32
    return %arg0, %c0_i32 : i32, i32
  }
  func.func @transform_1(%arg0: i32) -> (i32, i32) {
    %c0_i32 = arith.constant 0 : i32
    %c0_i32_0 = arith.constant 0 : i32
    return %arg0, %c0_i32 : i32, i32
  }
  func.func @transform_2(%arg0: i32) -> (i32, i32) {
    %c0_i32 = arith.constant 0 : i32
    %c0_i32_0 = arith.constant 0 : i32
    %c0_i32_1 = arith.constant 0 : i32
    return %c0_i32, %c0_i32_0 : i32, i32
  }
  func.func @transform_3(%arg0: i32) -> (i32, i32) {
    %c0_i32 = arith.constant 0 : i32
    %c0_i32_0 = arith.constant 0 : i32
    %c0_i32_1 = arith.constant 0 : i32
    return %c0_i32, %c0_i32_0 : i32, i32
  }
  func.func @transform_4(%arg0: i32) -> (i32, i32) {
    %c0_i32 = arith.constant 0 : i32
    %c0_i32_0 = arith.constant 0 : i32
    %c0_i32_1 = arith.constant 0 : i32
    return %c0_i32, %c0_i32_0 : i32, i32
  }
  func.func @transform_5(%arg0: i32) -> (i32, i32) {
    %c0_i32 = arith.constant 0 : i32
    %c0_i32_0 = arith.constant 0 : i32
    %c0_i32_1 = arith.constant 0 : i32
    return %c0_i32, %c0_i32_0 : i32, i32
  }
  func.func @transform_6(%arg0: i32) -> (i32, i32) {
    %c0_i32 = arith.constant 0 : i32
    %c0_i32_0 = arith.constant 0 : i32
    %c0_i32_1 = arith.constant 0 : i32
    return %c0_i32, %c0_i32_0 : i32, i32
  }
  func.func @transform_7(%arg0: i32) -> i32 {
    %c0_i32 = arith.constant 0 : i32
    %c0_i32_0 = arith.constant 0 : i32
    return %c0_i32 : i32
  }
  func.func @transform_8(%arg0: i32) -> (i32, i32) {
    %c0_i32 = arith.constant 0 : i32
    %c0_i32_0 = arith.constant 0 : i32
    return %arg0, %c0_i32 : i32, i32
  }
  func.func @transform_9(%arg0: i32) -> (i32, i32) {
    %c0_i32 = arith.constant 0 : i32
    %c0_i32_0 = arith.constant 0 : i32
    return %arg0, %c0_i32 : i32, i32
  }
}

</mosaic_0001>

<bundles_post_ra>
// kernel: fused_aux_heads.1
= control target key start
LH: loop header
LB: loop body
LE: loop exit
PB: predicated region body
PF: predicated region fallthrough
CT: control target
= control target key end

     0   :  { %15 = vsyncpa [#allocation4], 0  ;;  %s1242_s0 = inlined_call_operand.vmem [shape: f32[64,32], index: 0, kind: input, shape index: {}]   ;;  %s1243_s1 = inlined_call_operand.vmem [shape: f32[64,1], index: 1, kind: input, shape index: {}]   ;;  %s1244_s2 = inlined_call_operand.vmem [shape: f32[32,32], index: 2, kind: input, shape index: {}]   ;;  %s1245_s3 = inlined_call_operand.vmem [shape: f32[1,32], index: 3, kind: input, shape index: {}]   ;;  %s1246_s4 = inlined_call_operand.vmem [shape: f32[32,128], index: 4, kind: input, shape index: {}]   ;;  %s1247_s5 = inlined_call_operand.vmem [shape: f32[1,128], index: 5, kind: input, shape index: {}]   ;;  %s1248_s6 = inlined_call_operand.vmem [shape: f32[1,32], index: 6, kind: input, shape index: {}]   ;;  %s1249_s7 = inlined_call_operand.vmem [shape: f32[3], index: 7, kind: input, shape index: {}]   ;;  %s1250_s8 = inlined_call_operand.hbm [shape: f32[64,128], index: 8, kind: output, shape index: {0}]   ;;  %s1251_s9 = inlined_call_operand.vmem [shape: f32[64,128], index: 9, kind: output, shape index: {1}]  }
   0x1   :  { %16 = vsyncpa [#allocation3], 0 }
   0x2   :  { %18 = vsyncpa [#allocation3 + $0x1], 0  ;;  %s1026_s30 = smov 0   ;;  %s1028_s10 = smov 0  }
   0x3   :  { %s1030_s11 = smov 0   ;;  %s1032_s12 = smov 0  }
   0x4 LB: > { %s1047_s13 = sadd.s32 4294967295, %s970_s12   ;;  %s777_s14 = sadd.s32 4294967294, %s970_s12   ;;  %s970_s12 = sphi %s1032_s12, %s1257_s12   ;;  %s966_s11 = sphi %s1030_s11, %s1256_s11   ;;  %s962_s10 = sphi %s1028_s10, %s1255_s10   ;;  %s958_s30 = sphi %s1026_s30, %s1254_s30  }
   0x5   : > { %s1051_s15 = sadd.s32 1, %s970_s12   ;;  %s209_s16 = sadd.s32 1, %s966_s11 }
   0x6   : > { %s206_s17 = ssub.s32 %s970_s12, %s1051_s15  ;;  %p219_p0 = scmp.ne.s32.totalorder %s966_s11, %s962_s10 }
   0x7   : > { %p207_p1 = scmp.eq.s32.totalorder %s206_s17, 0  ;;  %p220_p2 = scmp.eq.s32.totalorder %s1047_s13, 1 }
   0x8   : > { %p225_p3 = scmp.ne.s32.totalorder %s962_s10, %s958_s30  ;;  %p226_p4 = scmp.eq.s32.totalorder %s777_s14, 1 }
   0x9   : > { %s1062_s18 = scalar_select %p207_p1, %s966_s11, %s209_s16  }
   0xa   : > { %p1064_p5 = por %p220_p2, %p219_p0  ;;  %p1068_p6 = por %p226_p4, %p225_p3 }
   0xb   : > { %p778_p7 = scmp.ge.s32.totalorder %s970_s12, 1  ;;  %p259_p8 = scmp.lt.s32.totalorder %s970_s12, 3 }
   0xc   : > { %p828_p9 = scmp.eq.s32.totalorder %s1047_s13, 0  ;;  %s286_s23 = sshll.u32 %s1249_s7, 4  ;;  %s287_s23 = int_to_ptr.vmem [resolvable:$true] %s286_s23 }
   0xd   : > { %p260_p10 = pnand %p778_p7, %p259_p8  ;;  %s972_s24 = smov [#allocation2]  }
   0xf   : > { %p820_p11 = pneg %p260_p10  ;;  %317 = sbr.rel (%p260_p10) target bundleno = 456 (0x1c8), region = 52 }
  0x11   : > { %p821_p12 = pnand %p828_p9, %p820_p11 }
  0x13   : > { %823 = dma.vmem_to_smem (!%p821_p12), %s287_s23, 16, %s972_s24, [#allocation4]  }
  0x14   : > { %949 = dma.done.wait (%p828_p9), [#allocation4], 16  }
  0x15   : > { %951 = vsyncadd (%p828_p9), [#allocation4], 4294967280 }
  0x16   : > { %324 = sfence }
  0x17   : > { %v391_v0 = vld [vmem:[%s1244_s2 + $0x18] sm:$0xff]  ;;  %v390_v1 = vld [vmem:[%s1244_s2 + $0x10] sm:$0xff]  ;;  %s784_s29 = sshll.u32 %s1047_s13, 2  ;;  %v389_v3 = vld [vmem:[%s1244_s2 + $0x8] sm:$0xff]  ;;  %vm396_vm0 = vcmask 261120   ;;  %s799_s28 = sld [smem:[#allocation2 + $0x2]] }
  0x18   : > { %421 = vmatpush.msra.mxu0 %v391_v0  ;;  %806 = vmatpush.msra.mxu2 %v391_v0  ;;  %p366_p13 = scmp.lt.s32.totalorder %s784_s29, 7  ;;  %v445_v2 = vld [vmem:[%s1246_s4 + $0x18] sm:$0xff]  ;;  %v388_v4 = vld [vmem:[%s1244_s2] sm:$0xff]  ;;  %v444_v9 = vld [vmem:[%s1246_s4 + $0x10] sm:$0xff]  ;;  %v973_v37 = vmov 0   ;;  %s575_s22 = sld [smem:[#allocation2]] }
  0x19   : > { %474 = vmatpush.msra.mxu1 %v445_v2  ;;  %810 = vmatpush.msra.mxu3 %v445_v2  ;;  %v443_v10 = vld [vmem:[%s1246_s4 + $0x8] sm:$0xff]  ;;  %v442_v11 = vld [vmem:[%s1246_s4] sm:$0xff]  ;;  %s924_s14 = scalar_lea.hbm %s1250_s8, 64 }
  0x1a   : > { %422 = vmatpush.msra.mxu0 %v390_v1  ;;  %807 = vmatpush.msra.mxu2 %v390_v1  ;;  %s1259_s29 = smov (!%p366_p13, %s784_s29), 7  ;;  %v871_v12 = vld [vmem:[%s1248_s6] ss:$0 sm:$0xff] }
  0x1b   : > { %s1094_s24 = sshll.u32 %s1259_s29, 3  ;;  %475 = vmatpush.msra.mxu1 %v444_v9  ;;  %811 = vmatpush.msra.mxu3 %v444_v9  ;;  %v870_v17 = vld [vmem:[%s1245_s3] ss:$0 sm:$0xff]  ;;  %s805_s29 = sshll.u32 %s1047_s13, 5 }
  0x1c   : > { %423 = vmatpush.msra.mxu0 %v389_v3  ;;  %808 = vmatpush.msra.mxu2 %v389_v3  ;;  %s369_s27 = scalar_lea.vmem %s1242_s0, %s1094_s24  ;;  %s1131_s16 = scalar_lea.vmem %s1243_s1, %s1094_s24  ;;  %v872_v41 = vld [vmem:[%s1247_s5] ss:$0 sm:$0xff]  ;;  %v605_v3 = vlaneseq }
  0x1d   : > { %v384_v5 = vld [vmem:[%s369_s27] sm:$0xff]  ;;  %v386_v6 = vld [vmem:[%s369_s27 + $0x10] sm:$0xff]  ;;  %v385_v7 = vld [vmem:[%s369_s27 + $0x8] sm:$0xff]  ;;  %476 = vmatpush.msra.mxu1 %v443_v10  ;;  %812 = vmatpush.msra.mxu3 %v443_v10  ;;  %v600_v36 = vstv %s799_s28  ;;  %s1167_s26 = scalar_lea.vmem %s1251_s9, %s1094_s24  ;;  %s355_s24 = sand.u32 1, %s962_s10  }
  0x1e   : > { %424 = vmatpush.msra.mxu0 %v388_v4  ;;  %809 = vmatpush.msra.mxu2 %v388_v4  ;;  %v387_v8 = vld [vmem:[%s369_s27 + $0x18] sm:$0xff]  ;;  %v559_v13 = vmul.f32 %v871_v12, %v384_v5  ;;  %v561_v14 = vmul.f32 %v871_v12, %v386_v6  ;;  %v560_v30 = vmul.f32 %v871_v12, %v385_v7  ;;  %s798_s27 = sld [smem:[#allocation2 + $0x1]]  ;;  %v589_v34 = vld [vmem:[%s1131_s16] sm:$0xff]  ;;  %v590_v55 = vld [vmem:[%s1131_s16 + $0x8] sm:$0xff]  ;;  %v1156_v63 = vstv %s575_s22  ;;  %s658_s17 = scalar_lea.hbm %s1250_s8, %s805_s29 }
  0x1f   : > { %790 = vmatmul.msk.f32.vlgmr.msra.gmra.mxu0 %vm396_vm0, %v384_v5  ;;  %792 = vmatmul.msk.f32.vlgmr.msra.gmra.mxu2 %vm396_vm0, %v386_v6  ;;  %v562_v32 = vmul.f32 %v871_v12, %v387_v8  ;;  %v592_v39 = vld [vmem:[%s1131_s16 + $0x18] sm:$0xff]  ;;  %v591_v59 = vld [vmem:[%s1131_s16 + $0x10] sm:$0xff]  ;;  %v1159_v4 = vand.u32 127, %v605_v3  ;;  %s661_s22 = sshll.u32 %s658_s17, 4  ;;  %s642_s13 = scalar_lea.sflag [#allocation3], %s355_s24  ;;  %s662_s22 = int_to_ptr.hbm [resolvable:$true] %s661_s22 }
  0x20   : > { %477 = vmatpush.msra.mxu1 %v442_v11  ;;  %813 = vmatpush.msra.mxu3 %v442_v11  ;;  %v563_v15 = vsel %vm396_vm0, %v559_v13, 0.0  ;;  %v569_v16 = vsel %vm396_vm0, %v561_v14, 0.0  ;;  %v566_v31 = vsel %vm396_vm0, %v560_v30, 0.0  ;;  %s918_s23 = sshra.s32 %s662_s22, 4  ;;  %s919_s23 = int_to_ptr.hbm [resolvable:$true] %s918_s23 }
  0x21   : > { %564 = vadd.xlane.f32.xlu2 %v563_v15  ;;  %570 = vadd.xlane.f32.xlu0 %v569_v16  ;;  %v572_v33 = vsel %vm396_vm0, %v562_v32, 0.0  ;;  %vm608_vm1 = vcmp.eq.s32.totalorder %v1159_v4, 1  ;;  %vm607_vm2 = vcmp.eq.s32.totalorder %v1159_v4, 0  ;;  %s920_s25 = scalar_lea.hbm %s919_s23, 32  ;;  %p925_p3 = scmp.lt.s32.totalorder %s919_s23, %s1250_s8 }
  0x22   : > { %573 = vadd.xlane.f32.xlu1 %v572_v33  ;;  %867 = vset.pattern.permute.xlu2 %v973_v37  ;;  %p921_p0 = scmp.ne.s32.totalorder %s919_s23, %s920_s25  ;;  %p926_p4 = scmp.lt.s32.totalorder %s924_s14, %s920_s25 }
  0x23   : > { %868 = vset.pattern.permute.xlu0 %v973_v37  ;;  %869 = vset.pattern.permute.xlu1 %v973_v37 }
  0x24   : > { %v594_v35 = vstv %s798_s27  ;;  %s783_s27 = sshll.u32 %s355_s24, 5  ;;  %p922_p1 = pnand %p921_p0, %p1064_p5 }
  0x25   : > { %v595_v38 = vmul.f32 %v594_v35, %v589_v34  ;;  %v598_v42 = vmul.f32 %v594_v35, %v592_v39  ;;  %v596_v57 = vmul.f32 %v594_v35, %v590_v55  ;;  %v597_v60 = vmul.f32 %v594_v35, %v591_v59  ;;  %s1181_s28 = scalar_lea.vmem [#allocation5], %s783_s27  ;;  %p927_p7 = por %p926_p4, %p925_p3 }
  0x26   : > { %s659_s21 = sshll.u32 %s1181_s28, 4  ;;  %p923_p2 = pneg %p922_p1  ;;  %s660_s21 = int_to_ptr.vmem [resolvable:$true] %s659_s21 }
  0x27   : > { %791 = vmatmul.msk.f32.gmra.mxu0 %vm396_vm0, %v385_v7  ;;  %793 = vmatmul.msk.f32.gmra.mxu2 %vm396_vm0, %v387_v8  ;;  %v601_v40 = vadd.f32 %v600_v36, %v595_v38  ;;  %v604_v45 = vadd.f32 %v600_v36, %v598_v42  ;;  %v602_v58 = vadd.f32 %v600_v36, %v596_v57 }
  0x28   : > { %v603_v61 = vadd.f32 %v600_v36, %v597_v60  ;;  %p928_p8 = pnand %p927_p7, %p923_p2 }
  0x29   : > { %567 = vadd.xlane.f32.xlu2 %v566_v31 }
  0x41   : > { %611 = vperm.xlu2 %867, %v601_v40  }
  0x49   : > { %626 = vperm.xlu2 %867, %v604_v45  }
  0x94   : > { %v565_v62 = vpop.xlane.xlu2 %564  ;;  %v1161_v6 = vpop.xlane.xlu0 %570 }
  0x95   : > { %v577_v0 = vadd.f32 %v1156_v63, %v565_v62  ;;  %v574_v12 = vpop.xlane.xlu1 %573 }
  0x97   : > { %v581_v1 = vmul.f32 1.442695, %v577_v0 }
  0x99   : > { %873 = vpow2.f32 %v581_v1 }
  0x9c   : > { %v426_v18 = vpop.f32.mrf.mxu0  ;;  %v568_v2 = vpop.xlane.xlu2 %567 }
  0x9d   : > { %v427_v19 = vadd.f32 %v870_v17, %v426_v18 }
  0x9f   : > { %v438_v20 = vmax.f32 %v427_v19, 0.0  ;;  %v874_v5 = vpop.eup %873 }
  0xa1   : > { %794 = vmatmul.msk.f32.vlgmr.msra.gmra.mxu1 %vm396_vm0, %v438_v20 }
  0xa2   : > { %v432_v21 = vpop.f32.mrf.mxu2 }
  0xa3   : > { %v433_v22 = vadd.f32 %v870_v17, %v432_v21 }
  0xa4   : > { %v429_v23 = vpop.f32.mrf.mxu0  ;;  %v612_v7 = vpop.permute.xlu2 %611 }
  0xa5   : > { %v440_v24 = vmax.f32 %v433_v22, 0.0  ;;  %v430_v25 = vadd.f32 %v870_v17, %v429_v23  ;;  %v629_v8 = vsel %vm608_vm1, %v612_v7, 0.0 }
  0xa6   : > { %v633_v9 = vsel %vm607_vm2, %v874_v5, %v629_v8 }
  0xa7   : > { %v439_v26 = vmax.f32 %v430_v25, 0.0  ;;  %796 = vmatmul.msk.f32.vlgmr.msra.gmra.mxu3 %vm396_vm0, %v440_v24  ;;  %637 = vst [vmem:[%s1167_s26] sm:$0xff] %v633_v9 }
  0xa9   : > { %795 = vmatmul.msk.f32.gmra.mxu1 %vm396_vm0, %v439_v26 }
  0xaa   : > { %v435_v27 = vpop.f32.mrf.mxu2 }
  0xab   : > { %v436_v28 = vadd.f32 %v870_v17, %v435_v27  ;;  %v578_v17 = vadd.f32 %v1156_v63, %v568_v2 }
  0xad   : > { %v441_v29 = vmax.f32 %v436_v28, 0.0  ;;  %v583_v22 = vmul.f32 1.442695, %v578_v17 }
  0xaf   : > { %797 = vmatmul.msk.f32.gmra.mxu3 %vm396_vm0, %v441_v29 }
 0x11e   : > { %v479_v43 = vpop.f32.mrf.mxu1 }
 0x11f   : > { %v1138_v44 = vadd.f32 %v872_v41, %v479_v43 }
 0x121   : > { %v491_v46 = vmul.f32 %v1138_v44, %v1138_v44 }
 0x123   : > { %495 = vadd.xlane.f32.xlu0 %v491_v46 }
 0x126   : > { %v482_v47 = vpop.f32.mrf.mxu1 }
 0x127   : > { %v1142_v48 = vadd.f32 %v872_v41, %v482_v47  ;;  %v580_v47 = vadd.f32 %v1156_v63, %v574_v12 }
 0x129   : > { %v492_v49 = vmul.f32 %v1142_v48, %v1142_v48 }
 0x12a   : > { %v485_v50 = vpop.f32.mrf.mxu3 }
 0x12b   : > { %v1146_v51 = vadd.f32 %v872_v41, %v485_v50  ;;  %497 = vadd.xlane.f32.xlu0 %v492_v49 }
 0x12d   : > { %v493_v52 = vmul.f32 %v1146_v51, %v1146_v51 }
 0x12f   : > { %499 = vadd.xlane.f32.xlu1 %v493_v52  ;;  %v579_v52 = vadd.f32 %v1156_v63, %v1161_v6 }
 0x132   : > { %v488_v53 = vpop.f32.mrf.mxu3 }
 0x133   : > { %v1150_v54 = vadd.f32 %v872_v41, %v488_v53 }
 0x135   : > { %v494_v56 = vmul.f32 %v1150_v54, %v1150_v54 }
 0x137   : > { %501 = vadd.xlane.f32.xlu1 %v494_v56  ;;  %v587_v56 = vmul.f32 1.442695, %v580_v47 }
 0x13f   : > { %616 = vperm.xlu0 %868, %v602_v58   ;;  %v585_v58 = vmul.f32 1.442695, %v579_v52 }
 0x150   : > { %621 = vperm.xlu1 %869, %v603_v61   ;;  %v627_v61 = vpop.permute.xlu2 %626 }
 0x151   : > { %v632_v0 = vsel %vm608_vm1, %v627_v61, 0.0 }
 0x196   : > { %v496_v10 = vpop.xlane.xlu0 %495 }
 0x197   : > { %v503_v11 = vmax.f32 %v496_v10, 1e-24 }
 0x199   : > { %875 = vrsqrt.f32 %v503_v11  ;;  %vm513_vm3 = vweird.f32 %v503_v11 }
 0x19e   : > { %v498_v13 = vpop.xlane.xlu0 %497 }
 0x19f   : > { %v876_v14 = vpop.eup %875  ;;  %v504_v15 = vmax.f32 %v498_v13, 1e-24 }
 0x1a0   : > { %v508_v16 = vmul.f32 %v876_v14, %v503_v11  ;;  %vm514_vm4 = vweird.f32 %v876_v14 }
 0x1a1   : > { %877 = vrsqrt.f32 %v504_v15  ;;  %vm515_vm5 = vmor %vm513_vm3, %vm514_vm4  ;;  %vm523_vm6 = vweird.f32 %v504_v15 }
 0x1a2   : > { %v509_v18 = vmul.f32 %v876_v14, %v508_v16  ;;  %v500_v19 = vpop.xlane.xlu1 %499 }
 0x1a3   : > { %v505_v20 = vmax.f32 %v500_v19, 1e-24 }
 0x1a4   : > { %v510_v21 = vmul.f32 0.5, %v509_v18 }
 0x1a5   : > { %879 = vrsqrt.f32 %v505_v20  ;;  %vm533_vm10 = vweird.f32 %v505_v20 }
 0x1a6   : > { %v511_v23 = vsub.f32 1.5, %v510_v21  ;;  %881 = vpow2.f32 %v583_v22 }
 0x1a7   : > { %v878_v24 = vpop.eup %877 }
 0x1a8   : > { %v512_v25 = vmul.f32 %v876_v14, %v511_v23  ;;  %v518_v26 = vmul.f32 %v878_v24, %v504_v15  ;;  %vm524_vm7 = vweird.f32 %v878_v24 }
 0x1a9   : > { %vm525_vm8 = vmor %vm523_vm6, %vm524_vm7 }
 0x1aa   : > { %v516_v27 = vsel %vm515_vm5, %v876_v14, %v512_v25  ;;  %v519_v28 = vmul.f32 %v878_v24, %v518_v26  ;;  %v502_v29 = vpop.xlane.xlu1 %501 }
 0x1ab   : > { %v880_v30 = vpop.eup %879  ;;  %v547_v31 = vmul.f32 %v516_v27, %v1138_v44  ;;  %v506_v32 = vmax.f32 %v502_v29, 1e-24 }
 0x1ac   : > { %v520_v33 = vmul.f32 0.5, %v519_v28  ;;  %v528_v34 = vmul.f32 %v880_v30, %v505_v20  ;;  %v882_v37 = vpop.eup %881  ;;  %vm534_vm9 = vweird.f32 %v880_v30 }
 0x1ad   : > { %551 = vst [vmem:[%s1181_s28] sm:$0xff] %v547_v31  ;;  %883 = vrsqrt.f32 %v506_v32  ;;  %vm535_vm11 = vmor %vm533_vm10, %vm534_vm9  ;;  %vm543_vm13 = vweird.f32 %v506_v32 }
 0x1ae   : > { %v521_v35 = vsub.f32 1.5, %v520_v33  ;;  %v529_v36 = vmul.f32 %v880_v30, %v528_v34  ;;  %885 = vpow2.f32 %v587_v56 }
 0x1af   : > { %887 = vpow2.f32 %v585_v58 }
 0x1b0   : > { %v522_v38 = vmul.f32 %v878_v24, %v521_v35  ;;  %v530_v39 = vmul.f32 0.5, %v529_v36 }
 0x1b1   : > { %v617_v40 = vpop.permute.xlu0 %616 }
 0x1b2   : > { %v526_v41 = vsel %vm525_vm8, %v878_v24, %v522_v38  ;;  %v531_v42 = vsub.f32 1.5, %v530_v39  ;;  %v630_v43 = vsel %vm608_vm1, %v617_v40, 0.0 }
 0x1b3   : > { %v884_v44 = vpop.eup %883  ;;  %v548_v45 = vmul.f32 %v526_v41, %v1142_v48  ;;  %v634_v46 = vsel %vm607_vm2, %v882_v37, %v630_v43 }
 0x1b4   : > { %v532_v49 = vmul.f32 %v880_v30, %v531_v42  ;;  %v538_v50 = vmul.f32 %v884_v44, %v506_v32  ;;  %638 = vst [vmem:[%s1167_s26 + $0x8] sm:$0xff] %v634_v46  ;;  %vm544_vm12 = vweird.f32 %v884_v44  ;;  %v886_v63 = vpop.eup %885 }
 0x1b5   : > { %552 = vst [vmem:[%s1181_s28 + $0x8] sm:$0xff] %v548_v45  ;;  %vm545_vm14 = vmor %vm543_vm13, %vm544_vm12 }
 0x1b6   : > { %v536_v53 = vsel %vm535_vm11, %v880_v30, %v532_v49  ;;  %v539_v55 = vmul.f32 %v884_v44, %v538_v50 }
 0x1b7   : > { %v549_v48 = vmul.f32 %v536_v53, %v1146_v51 }
 0x1b8   : > { %v540_v57 = vmul.f32 0.5, %v539_v55 }
 0x1b9   : > { %553 = vst [vmem:[%s1181_s28 + $0x10] sm:$0xff] %v549_v48 }
 0x1ba   : > { %v541_v59 = vsub.f32 1.5, %v540_v57 }
 0x1bc   : > { %v542_v60 = vmul.f32 %v884_v44, %v541_v59 }
 0x1be   : > { %v546_v51 = vsel %vm545_vm14, %v884_v44, %v542_v60 }
 0x1bf   : > { %v550_v62 = vmul.f32 %v546_v51, %v1150_v54 }
 0x1c1   : > { %554 = vst [vmem:[%s1181_s28 + $0x18] sm:$0xff] %v550_v62 }
 0x1c2   : > { %v622_v1 = vpop.permute.xlu1 %621 }
 0x1c3   : > { %931 = shalt.err (!%p928_p8)
}
 0x1c4   : > { %s974_s24 = smov 128   ;;  %s975_s17 = smov 8   ;;  %v888_v54 = vpop.eup %887  ;;  %v631_v2 = vsel %vm608_vm1, %v622_v1, 0.0  ;;  %v636_v5 = vsel %vm607_vm2, %v886_v63, %v632_v0 }
 0x1c5   : > { %818 = dma.vmem_to_hbm [thread:$0]  (%p1064_p5), %s660_s21, 512, %s662_s22, %s642_s13, %s974_s24, %s974_s24, %s975_s17   ;;  %v635_v3 = vsel %vm607_vm2, %v888_v54, %v631_v2 }
 0x1c6   : > { %639 = vst [vmem:[%s1167_s26 + $0x10] sm:$0xff] %v635_v3 }
 0x1c7   : > { %640 = vst [vmem:[%s1167_s26 + $0x18] sm:$0xff] %v636_v5 }
 0x1c8 PF: > { %p830_p9 = scmp.ge.s32.totalorder %s970_s12, 2  ;;  %s680_s23 = sand.u32 1, %s958_s30  }
 0x1c9   : > { %s681_s19 = scalar_lea.sflag [#allocation3], %s680_s23 }
 0x1ca   : > { %p825_p5 = pnand %p830_p9, %p1068_p6 }
 0x1cc   : > { %p826_p10 = pneg %p825_p5 }
 0x1ce   : > { %953 = dma.done.wait (%p826_p10), %s681_s19, 512  }
 0x1cf   : > { %955 = vsyncadd (%p826_p10), %s681_s19, 4294966784  ;;  %p21_p11 = scmp.ge.s32.totalorder %s1051_s15, 4   ;;  %s1254_s30 = smov %s962_s10 }
 0x1d0   : > { %s1255_s10 = smov %s966_s11  ;;  %s1256_s11 = smov %s1062_s18 }
 0x1d1   : > { %s1257_s12 = smov %s1051_s15  ;;  %23 = sbr.rel (!%p21_p11) target bundleno = 4 (0x4), region = 107 }
 0x1d6   :  { %695 = vsyncpa [#allocation3], 1 }
 0x1d7   :  { %697 = vsyncpa [#allocation3 + $0x1], 1 }
 0x1d8   :  { %698 = vsyncpa [#allocation4], 1 }
 0x1d9   :  { %700 = vsyncpa [#allocation4 + $0x1], 1 }

</bundles_post_ra>
